<compile_context>
chip_gen: v7x
topology: tpu7x:2x2x1
jax: 0.10.0
libtpu: 0.0.40
codegen_flags: <defaults>
</compile_context>

<pallas_src>
import functools
import math

import jax
import jax.numpy as jnp
from jax import lax
from jax.experimental import pallas as pl
from jax.experimental.pallas import tpu as pltpu


def _value_mlp_kernel(num_hidden, use_bf16, *refs):
    """refs = (x, w0_t, b0, ..., w_{H-1}_t, b_{H-1}, w_last_row, b_last_smem, out).

    Layout: batch rides on the LANE axis for the whole network.
      x block:      (batch_tile, num_inputs)   -- as stored in HBM
      hidden acts:  (hidden_dim, batch_tile)   -- h^T, lane-dense in batch
      weights:      (out_dim, in_dim)          -- pre-transposed (PyTorch layout)
      biases:       (out_dim, 1)               -- broadcast along lanes
      output block: (1, batch_tile)            -- lands directly, no relayout
    """
    x_ref = refs[0]
    out_ref = refs[-1]
    params = refs[1:-1]

    act_dtype = jnp.bfloat16 if use_bf16 else jnp.float32
    acts = x_ref[...].astype(act_dtype)            # (batch_tile, num_inputs)

    # First layer contracts x's feature axis (axis 1); subsequent layers
    # contract h^T's feature axis (axis 0).  Result is always (out_dim, bt).
    contract_axis = 1
    for layer in range(num_hidden):
        w = params[2 * layer][...]                 # (out_dim, in_dim)
        b = params[2 * layer + 1][...]             # (out_dim, 1)
        y = lax.dot_general(                       # MXU: N = batch_tile, lane-dense
            w, acts,
            dimension_numbers=(((1,), (contract_axis,)), ((), ())),
            preferred_element_type=jnp.float32)    # (out_dim, batch_tile), f32 acc
        # bias-add + ReLU stay in the activation dtype: lane-dense; bf16 on
        # v6e/v7x halves vreg / spill pressure (use_bf16=False -> pure f32).
        acts = jnp.maximum(y.astype(act_dtype) + b, 0.0)
        contract_axis = 0

    # Final hidden -> 1 layer: (1, hidden) x (hidden, batch_tile) lands directly
    # in the lane-dense (1, batch_tile) output block -- no XLU lane-reduce, no
    # sublane->lane relayout before the store.
    w_last = params[-2][...]                       # (1, hidden_last)
    b_last = params[-1][0]                         # scalar f32 (SMEM)
    v = lax.dot_general(
        w_last, acts,
        dimension_numbers=(((1,), (contract_axis,)), ((), ())),
        preferred_element_type=jnp.float32)        # (1, batch_tile)
    out_ref[...] = (v + b_last).astype(out_ref.dtype)


def _largest_tile_divisor(B, cap):
    """Largest multiple-of-128 divisor of B that is <= cap (0 if none)."""
    best = 0
    t = 128
    while t <= cap:
        if B % t == 0:
            best = t
        t += 128
    return best


def _choose_batch_tile(B, num_inputs, hidden_dims, use_bf16):
    """Default batch tile.

    Constraints / goals:
      * (1, batch_tile) lane-dense output block -> batch_tile % 128 == 0
        whenever batch_tile < B (also satisfies the 8-sublane input-block rule).
      * Large tiles amortize the ~0.35us per-grid-step overhead.
      * Keep the batch-dependent VMEM footprint (state double-buffer + live
        activation slabs + output) within a conservative budget (v7x: 64 MiB
        physical / 32 MiB default-scoped).
      * B >= 256 splits into >= 2 parallel grid steps so v7x's second
        TensorCore gets work.
    """
    act_itemsize = 2 if use_bf16 else 4
    max_dim = max([num_inputs] + list(hidden_dims) + [1])
    per_row = (2 * num_inputs * 4              # double-buffered f32 state tile
               + 2 * max_dim * act_itemsize    # two live activation slabs
               + max_dim * 4                   # f32 matmul result slab
               + 2 * 4)                        # double-buffered output row
    budget = 24 << 20                          # batch-dependent VMEM budget
    cap = max(128, min(4096, (budget // per_row) // 128 * 128))

    if B <= cap:
        if B >= 256:
            d = _largest_tile_divisor(B, B // 2)
            if d:
                return d                       # >=2 parallel steps (v7x megacore)
        return B                               # full-array block: always legal
    d = _largest_tile_divisor(B, cap)
    if d == 0:
        raise ValueError(
            f"batch={B} exceeds the VMEM-derived tile cap ({cap}) and has no "
            "multiple-of-128 divisor; pad the batch to a multiple of 128.")
    return d


def _vmem_limit_bytes(batch_tile, num_inputs, dims, flat_params, use_bf16):
    """Explicit scoped-VMEM request from the real footprint (+headroom)."""
    act_itemsize = 2 if use_bf16 else 4
    max_dim = max(dims)
    state_bytes = 2 * batch_tile * num_inputs * 4        # double-buffered input tile
    out_bytes = 2 * batch_tile * 4                       # double-buffered output row
    param_bytes = 2 * sum(int(p.size) * p.dtype.itemsize for p in flat_params)
    act_bytes = batch_tile * max_dim * (4 + 2 * act_itemsize)
    total = state_bytes + out_bytes + param_bytes + act_bytes + (2 << 20)
    return int(min(max(total, 8 << 20), 48 << 20))       # stay under v7x's 64 MiB


def prepare_value_network_params(weights, biases, use_bf16=True):
    """One-time parameter prep (hoist out of the per-step hot path).

    weights: list of (in_dim, out_dim) f32 arrays; biases: list of (1, out_dim).
    Hidden weights become (out_dim, in_dim) MXU-operand-dtype tiles, hidden
    biases become (out_dim, 1) columns, the last layer becomes a (1, hidden)
    row plus a scalar f32 SMEM bias.
    """
    assert weights[-1].shape[1] == 1, "value head must end in a width-1 layer"
    compute_dtype = jnp.bfloat16 if use_bf16 else jnp.float32
    num_hidden = len(weights) - 1
    dims = [int(weights[0].shape[0])] + [int(w.shape[1]) for w in weights]

    flat = []
    for layer in range(num_hidden):
        w_t = jnp.asarray(weights[layer]).T.astype(compute_dtype)              # (out, in)
        b_c = jnp.asarray(biases[layer]).reshape(-1, 1).astype(compute_dtype)  # (out, 1)
        flat += [w_t, b_c]
    w_last = jnp.asarray(weights[-1]).reshape(1, -1).astype(compute_dtype)     # (1, hidden)
    b_last = jnp.asarray(biases[-1]).reshape(1).astype(jnp.float32)            # SMEM scalar
    flat += [w_last, b_last]
    return {"flat": flat, "use_bf16": use_bf16, "num_hidden": num_hidden, "dims": dims}


def value_network_apply(state, params, *, batch_tile=None):
    """Run the fused ValueNetwork kernel on prepared parameters."""
    flat = params["flat"]
    use_bf16 = params["use_bf16"]
    num_hidden = params["num_hidden"]
    dims = params["dims"]                      # [num_inputs, *hidden_dims, 1]

    B, num_inputs = state.shape
    assert num_inputs == dims[0], (num_inputs, dims)

    if batch_tile is None:
        batch_tile = _choose_batch_tile(B, num_inputs, dims[1:-1], use_bf16)
    assert B % batch_tile == 0, (B, batch_tile)
    # Lane-dense (1, batch_tile) output block: multiple of 128 lanes unless the
    # block spans the whole batch (full-array blocks are always legal).
    assert batch_tile == B or batch_tile % 128 == 0, batch_tile

    grid = (B // batch_tile,)

    in_specs = [pl.BlockSpec((batch_tile, num_inputs), lambda i: (i, 0))]
    for layer in range(num_hidden):
        w, b = flat[2 * layer], flat[2 * layer + 1]
        # Constant index_map -> Pallas keeps the weights resident across steps.
        in_specs.append(pl.BlockSpec(w.shape, lambda i: (0, 0)))
        in_specs.append(pl.BlockSpec(b.shape, lambda i: (0, 0)))
    w_last = flat[-2]
    in_specs.append(pl.BlockSpec(w_last.shape, lambda i: (0, 0)))
    in_specs.append(pl.BlockSpec(memory_space=pltpu.MemorySpace.SMEM))  # b_last

    # Lane-dense output: (1, B) with batch on the lane axis.
    out_specs = pl.BlockSpec((1, batch_tile), lambda i: (0, i))

    flops = 2 * B * sum(dims[i] * dims[i + 1] for i in range(len(dims) - 1))
    bytes_accessed = (int(state.size) * state.dtype.itemsize
                      + sum(int(p.size) * p.dtype.itemsize for p in flat)
                      + B * 4)
    cost = pl.CostEstimate(flops=flops, transcendentals=0,
                           bytes_accessed=bytes_accessed)

    kernel = functools.partial(_value_mlp_kernel, num_hidden, use_bf16)

    out = pl.pallas_call(
        kernel,
        out_shape=jax.ShapeDtypeStruct((1, B), jnp.float32),
        grid_spec=pltpu.PrefetchScalarGridSpec(
            num_scalar_prefetch=0,
            grid=grid,
            in_specs=in_specs,
            out_specs=out_specs,
        ),
        compiler_params=pltpu.CompilerParams(
            dimension_semantics=("parallel",),
            vmem_limit_bytes=_vmem_limit_bytes(
                batch_tile, num_inputs, dims, flat, use_bf16),
        ),
        cost_estimate=cost,
    )(state, *flat)

    # (1, B) -> (B, 1): size-1 major dim, pure relabel.  Always f32, matching
    # the PyTorch module (its output dtype is the parameter dtype).
    return out.reshape(B, 1)


def value_network_forward(state, weights, biases, *, batch_tile=None, use_bf16=True):
    """Convenience wrapper: prep + apply.  For repeated calls with fixed params,
    call prepare_value_network_params once and reuse value_network_apply."""
    params = prepare_value_network_params(weights, biases, use_bf16=use_bf16)
    return value_network_apply(state, params, batch_tile=batch_tile)


def init_value_network_params(key, num_inputs, hidden_dims):
    """Xavier-uniform weights (gain=1), zero biases — mirrors weights_init_."""
    dims = [num_inputs] + list(hidden_dims) + [1]
    weights, biases = [], []
    for i in range(len(dims) - 1):
        fan_in, fan_out = dims[i], dims[i + 1]
        key, sub = jax.random.split(key)
        bound = math.sqrt(6.0 / (fan_in + fan_out))
        w = jax.random.uniform(
            sub, (fan_in, fan_out), dtype=jnp.float32, minval=-bound, maxval=bound)
        b = jnp.zeros((1, fan_out), dtype=jnp.float32)
        weights.append(w)
        biases.append(b)
    return weights, biases


def value_network_ref(state, weights, biases):
    """Pure-JAX reference for correctness checking."""
    h = state
    for i, (w, b) in enumerate(zip(weights, biases)):
        h = h @ w + b
        if i < len(weights) - 1:
            h = jnp.maximum(h, 0.0)
    return h


if __name__ == "__main__":
    key = jax.random.PRNGKey(0)

    batch = 8
    num_inputs = 32
    hidden_dims = (32, 32)

    key, k_state, k_params = jax.random.split(key, 3)
    state = jax.random.normal(k_state, (batch, num_inputs), dtype=jnp.float32)
    weights, biases = init_value_network_params(k_params, num_inputs, hidden_dims)
    ref = value_network_ref(state, weights, biases)

    # Pure-f32 path (near-exact parity with the PyTorch module).
    out_f32 = jax.block_until_ready(
        value_network_forward(state, weights, biases, use_bf16=False))
    assert out_f32.shape == (batch, 1), out_f32.shape
    assert jnp.allclose(out_f32, ref, atol=1e-4, rtol=1e-4), (out_f32, ref)

    # bf16 MXU-operand + bf16 elementwise path (default; f32 accumulation).
    out_bf16 = jax.block_until_ready(
        value_network_forward(state, weights, biases, use_bf16=True))
    assert out_bf16.shape == (batch, 1), out_bf16.shape
    assert jnp.allclose(out_bf16, ref, atol=5e-2, rtol=5e-2), (out_bf16, ref)

    # Multi-grid-step path: 2 parallel lane-dense 128-wide tiles (auto-chosen),
    # exercising the (1, batch_tile) output blocks and the megacore split.
    big_batch = 256
    key, k_big = jax.random.split(key)
    state_big = jax.random.normal(k_big, (big_batch, num_inputs), dtype=jnp.float32)
    ref_big = value_network_ref(state_big, weights, biases)
    params_big = prepare_value_network_params(weights, biases, use_bf16=True)
    out_big = jax.block_until_ready(value_network_apply(state_big, params_big))
    assert out_big.shape == (big_batch, 1), out_big.shape
    assert jnp.allclose(out_big, ref_big, atol=5e-2, rtol=5e-2), (out_big, ref_big)

    print("KERNEL_OK")
</pallas_src>

<mosaic_0001>
module attributes {stable_mosaic.version = 11 : i64} {
  func.func @_value_mlp_kernel(%arg0: i32, %arg1: memref<8x32xf32, #tpu.memory_space<vmem>>, %arg2: memref<32x32xf32, #tpu.memory_space<vmem>>, %arg3: memref<32x1xf32, #tpu.memory_space<vmem>>, %arg4: memref<32x32xf32, #tpu.memory_space<vmem>>, %arg5: memref<32x1xf32, #tpu.memory_space<vmem>>, %arg6: memref<1x32xf32, #tpu.memory_space<vmem>>, %arg7: memref<1xf32, #tpu.memory_space<smem>>, %arg8: memref<1x8xf32, #tpu.memory_space<vmem>>) attributes {dimension_semantics = [#tpu.dimension_semantics<parallel>], iteration_bounds = array<i64: 1>, scalar_prefetch = 0 : i64, scratch_operands = 0 : i64, tpu.core_type = #tpu.core_type<tc>, window_params = [{transform_indices = @transform_0, window_bounds = array<i64: 8, 32>}, {pipeline_mode = #tpu.pipeline_mode<synchronous>, transform_indices = @transform_1, window_bounds = array<i64: 32, 32>}, {pipeline_mode = #tpu.pipeline_mode<synchronous>, transform_indices = @transform_2, window_bounds = array<i64: 32, 1>}, {pipeline_mode = #tpu.pipeline_mode<synchronous>, transform_indices = @transform_3, window_bounds = array<i64: 32, 32>}, {pipeline_mode = #tpu.pipeline_mode<synchronous>, transform_indices = @transform_4, window_bounds = array<i64: 32, 1>}, {pipeline_mode = #tpu.pipeline_mode<synchronous>, transform_indices = @transform_5, window_bounds = array<i64: 1, 32>}, {transform_indices = @transform_6, window_bounds = array<i64: 1>}, {transform_indices = @transform_7, window_bounds = array<i64: 1, 8>}]} {
    %c0 = arith.constant 0 : index
    %c0_0 = arith.constant 0 : index
    %0 = vector.load %arg1[%c0, %c0_0] : memref<8x32xf32, #tpu.memory_space<vmem>>, vector<8x32xf32>
    %c0_1 = arith.constant 0 : index
    %c0_2 = arith.constant 0 : index
    %1 = vector.load %arg2[%c0_1, %c0_2] : memref<32x32xf32, #tpu.memory_space<vmem>>, vector<32x32xf32>
    %c0_3 = arith.constant 0 : index
    %c0_4 = arith.constant 0 : index
    %2 = vector.load %arg3[%c0_3, %c0_4] : memref<32x1xf32, #tpu.memory_space<vmem>>, vector<32x1xf32>
    %cst = arith.constant dense<0.000000e+00> : vector<32x8xf32>
    %3 = tpu.matmul %1, %0, %cst {dimension_numbers = #tpu.dot_dimension_numbers<[1], [1], [0], [0], [0, 0, 1, 0], [], []>} : vector<32x32xf32>, vector<8x32xf32>, vector<32x8xf32> -> vector<32x8xf32>
    %4 = vector.broadcast %2 : vector<32x1xf32> to vector<32x8xf32>
    %5 = arith.addf %3, %4 : vector<32x8xf32>
    %cst_5 = arith.constant 0.000000e+00 : f32
    %6 = vector.broadcast %cst_5 : f32 to vector<32x8xf32>
    %7 = arith.maximumf %5, %6 : vector<32x8xf32>
    %c0_6 = arith.constant 0 : index
    %c0_7 = arith.constant 0 : index
    %8 = vector.load %arg4[%c0_6, %c0_7] : memref<32x32xf32, #tpu.memory_space<vmem>>, vector<32x32xf32>
    %c0_8 = arith.constant 0 : index
    %c0_9 = arith.constant 0 : index
    %9 = vector.load %arg5[%c0_8, %c0_9] : memref<32x1xf32, #tpu.memory_space<vmem>>, vector<32x1xf32>
    %cst_10 = arith.constant dense<0.000000e+00> : vector<32x8xf32>
    %10 = tpu.matmul %8, %7, %cst_10 {dimension_numbers = #tpu.dot_dimension_numbers<[1], [0], [0], [1], [0, 0, 1, 1], [], []>} : vector<32x32xf32>, vector<32x8xf32>, vector<32x8xf32> -> vector<32x8xf32>
    %11 = vector.broadcast %9 : vector<32x1xf32> to vector<32x8xf32>
    %12 = arith.addf %10, %11 : vector<32x8xf32>
    %cst_11 = arith.constant 0.000000e+00 : f32
    %13 = vector.broadcast %cst_11 : f32 to vector<32x8xf32>
    %14 = arith.maximumf %12, %13 : vector<32x8xf32>
    %c0_12 = arith.constant 0 : index
    %c0_13 = arith.constant 0 : index
    %15 = vector.load %arg6[%c0_12, %c0_13] : memref<1x32xf32, #tpu.memory_space<vmem>>, vector<1x32xf32>
    %c0_14 = arith.constant 0 : index
    %16 = memref.load %arg7[%c0_14] : memref<1xf32, #tpu.memory_space<smem>>
    %cst_15 = arith.constant dense<0.000000e+00> : vector<1x8xf32>
    %17 = tpu.matmul %15, %14, %cst_15 {dimension_numbers = #tpu.dot_dimension_numbers<[1], [0], [0], [1], [0, 0, 1, 1], [], []>} : vector<1x32xf32>, vector<32x8xf32>, vector<1x8xf32> -> vector<1x8xf32>
    %18 = vector.broadcast %16 : f32 to vector<1x8xf32>
    %19 = arith.addf %17, %18 : vector<1x8xf32>
    %c0_16 = arith.constant 0 : index
    %c0_17 = arith.constant 0 : index
    %20 = vector.load %arg8[%c0_16, %c0_17] : memref<1x8xf32, #tpu.memory_space<vmem>>, vector<1x8xf32>
    tpu.vector_store %arg8[%c0_16, %c0_17], %19 {strides = array<i32>} : memref<1x8xf32, #tpu.memory_space<vmem>>, vector<1x8xf32>,
    return
  }
  func.func @transform_0(%arg0: i32) -> (i32, i32) {
    %c0_i32 = arith.constant 0 : i32
    %c0_i32_0 = arith.constant 0 : i32
    return %arg0, %c0_i32 : i32, i32
  }
  func.func @transform_1(%arg0: i32) -> (i32, i32) {
    %c0_i32 = arith.constant 0 : i32
    %c0_i32_0 = arith.constant 0 : i32
    %c0_i32_1 = arith.constant 0 : i32
    return %c0_i32, %c0_i32_0 : i32, i32
  }
  func.func @transform_2(%arg0: i32) -> (i32, i32) {
    %c0_i32 = arith.constant 0 : i32
    %c0_i32_0 = arith.constant 0 : i32
    %c0_i32_1 = arith.constant 0 : i32
    return %c0_i32, %c0_i32_0 : i32, i32
  }
  func.func @transform_3(%arg0: i32) -> (i32, i32) {
    %c0_i32 = arith.constant 0 : i32
    %c0_i32_0 = arith.constant 0 : i32
    %c0_i32_1 = arith.constant 0 : i32
    return %c0_i32, %c0_i32_0 : i32, i32
  }
  func.func @transform_4(%arg0: i32) -> (i32, i32) {
    %c0_i32 = arith.constant 0 : i32
    %c0_i32_0 = arith.constant 0 : i32
    %c0_i32_1 = arith.constant 0 : i32
    return %c0_i32, %c0_i32_0 : i32, i32
  }
  func.func @transform_5(%arg0: i32) -> (i32, i32) {
    %c0_i32 = arith.constant 0 : i32
    %c0_i32_0 = arith.constant 0 : i32
    %c0_i32_1 = arith.constant 0 : i32
    return %c0_i32, %c0_i32_0 : i32, i32
  }
  func.func @transform_6(%arg0: i32) -> i32 {
    %c0_i32 = arith.constant 0 : i32
    %c0_i32_0 = arith.constant 0 : i32
    return %c0_i32 : i32
  }
  func.func @transform_7(%arg0: i32) -> (i32, i32) {
    %c0_i32 = arith.constant 0 : i32
    %c0_i32_0 = arith.constant 0 : i32
    return %c0_i32, %arg0 : i32, i32
  }
}

</mosaic_0001>

<bundles_post_ra>
// kernel: tpu_custom_call.1
= control target key start
LH: loop header
LB: loop body
LE: loop exit
PB: predicated region body
PF: predicated region fallthrough
CT: control target
= control target key end

     0   :  { %13 = vsyncpa [#allocation4], 0  ;;  %s662_s0 = inlined_call_operand.hbm [shape: f32[8,32], index: 0, kind: input, shape index: {}]   ;;  %s663_s1 = inlined_call_operand.vmem [shape: f32[32,32], index: 1, kind: input, shape index: {}]   ;;  %s664_s2 = inlined_call_operand.vmem [shape: f32[32,1], index: 2, kind: input, shape index: {}]   ;;  %s665_s3 = inlined_call_operand.vmem [shape: f32[32,32], index: 3, kind: input, shape index: {}]   ;;  %s666_s4 = inlined_call_operand.vmem [shape: f32[32,1], index: 4, kind: input, shape index: {}]   ;;  %s667_s5 = inlined_call_operand.vmem [shape: f32[1,32], index: 5, kind: input, shape index: {}]   ;;  %s668_s6 = inlined_call_operand.<no memory space> [shape: f32[1], index: 6, kind: input, shape index: {}]   ;;  %s669_s7 = inlined_call_operand.hbm [shape: f32[1,8], index: 7, kind: output, shape index: {}]  }
   0x1   :  { %14 = vsyncpa [#allocation5], 0  ;;  %s527_s24 = smov [#allocation3]   ;;  %s479_s28 = scalar_lea.hbm %s662_s0, 128 }
   0x2   :  { %s21_s25 = sshll.u32 %s527_s24, 4  ;;  %p480_p0 = scmp.ne.s32.totalorder %s662_s0, %s479_s28  ;;  %s22_s25 = int_to_ptr.vmem [resolvable:$true] %s21_s25 }
   0x3   :  { %p483_p1 = scmp.lt.u32.totalorder %s479_s28, %s662_s0 }
   0x5   :  { %p485_p2 = pnand %p483_p1, %p480_p0 }
   0x7   :  { %488 = shalt.err (!%p485_p2)
}
   0x8   :  { %s489_s10 = scalar_lea.vmem %s22_s25, 128  ;;  %p494_p4 = scmp.lt.s32.totalorder %s22_s25, %s22_s25 }
   0x9   :  { %p490_p3 = scmp.ne.s32.totalorder %s22_s25, %s489_s10  ;;  %p495_p5 = scmp.lt.s32.totalorder %s489_s10, %s489_s10 }
   0xb   :  { %p496_p6 = por %p495_p5, %p494_p4 }
   0xd   :  { %p497_p7 = pnand %p496_p6, %p490_p3 }
   0xf   :  { %500 = shalt.err (!%p497_p7)
}
  0x10   :  { %24 = dma.hbm_to_vmem [thread:$0]  %s662_s0, 128, %s22_s25, [#allocation4]  }
  0x11   :  { %523 = dma.done.wait [#allocation4], 128  }
  0x12   :  { %524 = vsyncadd [#allocation4], 4294967168  ;;  %v528_v0 = vmov 0   ;;  %vm69_vm0 = vcmask 261120   ;;  %v40_v1 = vld [vmem:[#allocation3] sm:$0xff]  ;;  %v42_v4 = vld [vmem:[%s663_s1 + $0x8] sm:$0xff]  ;;  %v305_v57 = vstv %s668_s6 }
  0x13   :  { %477 = vset.pattern.permute.xlu0 %v528_v0  ;;  %478 = vset.pattern.permute.xlu1 %v528_v0  ;;  %v41_v2 = vld [vmem:[%s663_s1] sm:$0xff]  ;;  %v47_v5 = vld [vmem:[%s664_s2 + $0x10] sm:$0xff]  ;;  %v46_v7 = vld [vmem:[%s664_s2 + $0x8] sm:$0xff]  ;;  %v529_v36 = vmov 0.0|0.0   ;;  %vm530_vm1 = vmmov 0   ;;  %v531_v37 = vmov 0.0  }
  0x14   :  { %424 = vmatprep.subr.msk.mxu0 %vm69_vm0, %v40_v1  ;;  %426 = vmatprep.mubr.msk.f32.mxu0 %vm69_vm0, %v41_v2  ;;  %v45_v3 = vld [vmem:[%s664_s2] sm:$0xff]  ;;  %v43_v6 = vld [vmem:[%s663_s1 + $0x10] sm:$0xff]  ;;  %v48_v8 = vld [vmem:[%s664_s2 + $0x18] sm:$0xff]  ;;  %s532_s20 = smov [#allocation6]   ;;  %vm379_vm2 = vcmask 57344  }
  0x15   :  { %425 = vmatpush3.xpose.msk.msra.mxu0 %vm69_vm0, %v40_v1  ;;  %51 = vperm.xlu0 %477, %v45_v3   ;;  %v44_v9 = vld [vmem:[%s663_s1 + $0x18] sm:$0xff]  ;;  %v178_v10 = vld [vmem:[%s666_s4] sm:$0xff]  ;;  %v179_v11 = vld [vmem:[%s666_s4 + $0x8] sm:$0xff]  ;;  %s387_s21 = sshll.u32 %s532_s20, 4  ;;  %s388_s21 = int_to_ptr.vmem [resolvable:$true] %s387_s21 }
  0x16   :  { %61 = vperm.xlu1 %478, %v47_v5   ;;  %v180_v12 = vld [vmem:[%s666_s4 + $0x10] sm:$0xff]  ;;  %v181_v13 = vld [vmem:[%s666_s4 + $0x18] sm:$0xff]  ;;  %v174_v14 = vld [vmem:[%s665_s3] sm:$0xff]  ;;  %465 = vmatprep.subr.bf16.mxu0 %v529_v36  ;;  %s501_s22 = scalar_lea.vmem %s388_s21, 16  ;;  %s505_s23 = scalar_lea.vmem %s388_s21, 32 }
  0x17   :  { %440 = vmatprep.mubr.msk.f32.mxu1 %vm69_vm0, %v174_v14  ;;  %v175_v33 = vld [vmem:[%s665_s3 + $0x8] sm:$0xff]  ;;  %v176_v34 = vld [vmem:[%s665_s3 + $0x10] sm:$0xff]  ;;  %v177_v35 = vld [vmem:[%s665_s3 + $0x18] sm:$0xff]  ;;  %p502_p8 = scmp.ne.s32.totalorder %s388_s21, %s501_s22  ;;  %p506_p9 = scmp.lt.s32.totalorder %s388_s21, %s388_s21 }
  0x18   :  { %427 = vmatmul.mubr.msk.f32.vlgmr.msra.gmra.mrb[0].mxu0 %vm69_vm0, %v42_v4  ;;  %v303_v56 = vld [vmem:[%s667_s5] sm:$0x1]  ;;  %p507_p10 = scmp.lt.s32.totalorder %s505_s23, %s501_s22 }
  0x19   :  { %429 = vmatprep.mubr.msk.f32.mxu0 %vm69_vm0, %v43_v6  ;;  %56 = vperm.xlu0 %477, %v46_v7  }
  0x1a   :  { %66 = vperm.xlu1 %478, %v48_v8   ;;  %p508_p11 = por %p507_p10, %p506_p9 }
  0x1c   :  { %430 = vmatmul.mubr.msk.f32.gmra.mrb[2].mxu0 %vm69_vm0, %v44_v9  ;;  %p509_p12 = pnand %p508_p11, %p502_p8 }
  0x1d   :  { %184 = vperm.xlu0 %477, %v178_v10   ;;  %454 = vmatprep.mubr.msk.f32.mxu0 %vm530_vm1, %v531_v37 }
  0x1e   :  { %189 = vperm.xlu1 %478, %v179_v11  }
  0x21   :  { %194 = vperm.xlu0 %477, %v180_v12  }
  0x22   :  { %199 = vperm.xlu1 %478, %v181_v13  }
  0x94   :  { %v52_v15 = vpop.permute.xlu0 %51 }
  0x95   :  { %v62_v16 = vpop.permute.xlu1 %61 }
  0x98   :  { %v57_v17 = vpop.permute.xlu0 %56 }
  0x99   :  { %v67_v23 = vpop.permute.xlu1 %66 }
  0x9c   :  { %v185_v39 = vpop.permute.xlu0 %184 }
  0x9d   :  { %v190_v38 = vpop.permute.xlu1 %189 }
  0xa0   :  { %v195_v48 = vpop.permute.xlu0 %194 }
  0xa1   :  { %v200_v45 = vpop.permute.xlu1 %199 }
  0xeb   :  { %v428_v18 = vpop.f32.mrb[0].mxu0 }
  0xec   :  { %v157_v19 = vadd.f32 %v428_v18, %v57_v17  ;;  %v151_v20 = vpop.f32.mrb[1].mxu0 }
  0xed   :  { %v152_v21 = vadd.f32 %v151_v20, %v52_v15 }
  0xee   :  { %v171_v22 = vmax.f32 %v157_v19, 0.0 }
  0xef   :  { %v170_v24 = vmax.f32 %v152_v21, 0.0  ;;  %v431_v25 = vpop.f32.mrb[2].mxu0 }
  0xf0   :  { %v167_v26 = vadd.f32 %v431_v25, %v67_v23  ;;  %v161_v27 = vpop.f32.mrb[3].mxu0 }
  0xf1   :  { %v162_v28 = vadd.f32 %v161_v27, %v62_v16  ;;  %v457_v29 = vpack.c.bf16 %v171_v22, %v170_v24 }
  0xf2   :  { %v173_v30 = vmax.f32 %v167_v26, 0.0 }
  0xf3   :  { %v172_v31 = vmax.f32 %v162_v28, 0.0  ;;  %458 = vmatprep.subr.bf16.mxu1 %v457_v29 }
  0xf4   :  { %460 = vmatpush3.bf16.msra.mxu1 %v457_v29 }
  0xf5   :  { %v461_v32 = vpack.c.bf16 %v173_v30, %v172_v31 }
  0xf7   :  { %462 = vmatprep.subr.bf16.mxu1 %v461_v32 }
  0xf8   :  { %464 = vmatpush3.bf16.msra.mxu1 %v461_v32 }
  0xfb   :  { %441 = vmatmul.mubr.msk.f32.vlgmr.msra.gmra.mrb[0].mxu1 %vm69_vm0, %v175_v33 }
  0xfc   :  { %443 = vmatprep.mubr.msk.f32.mxu1 %vm69_vm0, %v176_v34 }
  0xff   :  { %444 = vmatmul.mubr.msk.f32.gmra.mrb[2].mxu1 %vm69_vm0, %v177_v35 }
 0x1ce   :  { %v442_v40 = vpop.f32.mrb[0].mxu1 }
 0x1cf   :  { %v286_v41 = vadd.f32 %v442_v40, %v190_v38  ;;  %v280_v42 = vpop.f32.mrb[1].mxu1 }
 0x1d0   :  { %v281_v43 = vadd.f32 %v280_v42, %v185_v39 }
 0x1d1   :  { %v300_v44 = vmax.f32 %v286_v41, 0.0 }
 0x1d2   :  { %v299_v46 = vmax.f32 %v281_v43, 0.0  ;;  %v445_v47 = vpop.f32.mrb[2].mxu1 }
 0x1d3   :  { %v296_v49 = vadd.f32 %v445_v47, %v200_v45  ;;  %v290_v50 = vpop.f32.mrb[3].mxu1 }
 0x1d4   :  { %v466_v51 = vpack.c.bf16 %v300_v44, %v299_v46  ;;  %v291_v52 = vadd.f32 %v290_v50, %v195_v48 }
 0x1d5   :  { %v302_v53 = vmax.f32 %v296_v49, 0.0 }
 0x1d6   :  { %v301_v54 = vmax.f32 %v291_v52, 0.0  ;;  %467 = vmatpush3.bf16.msra.mxu0 %v466_v51 }
 0x1d7   :  { %468 = vmatprep.subr.bf16.mxu0 %v529_v36 }
 0x1d8   :  { %v469_v55 = vpack.c.bf16 %v302_v53, %v301_v54 }
 0x1da   :  { %470 = vmatpush3.bf16.msra.mxu0 %v469_v55 }
 0x1dd   :  { %455 = vmatmul.mubr.msk.f32.vlgmr.msra.gmra.mrb[4].mxu0 %vm69_vm0, %v303_v56 }
 0x2b0   :  { %v375_v58 = vpop.f32.mrb[4].mxu0 }
 0x2b1   :  { %v376_v59 = vadd.f32 %v375_v58, %v305_v57  ;;  %v456_v60 = vpop.f32.mrb[5].mxu0 }
 0x2b3   :  { %380 = vst.msk [vmem:[#allocation6] sm:$0x1] %vm379_vm2, %v376_v59 }
 0x2b4   :  { %512 = shalt.err (!%p509_p12)
}
 0x2b5   :  { %s513_s6 = scalar_lea.hbm %s669_s7, 16 }
 0x2b6   :  { %p514_p13 = scmp.ne.s32.totalorder %s669_s7, %s513_s6  ;;  %p517_p0 = scmp.lt.u32.totalorder %s513_s6, %s669_s7 }
 0x2b8   :  { %p519_p1 = pnand %p517_p0, %p514_p13 }
 0x2ba   :  { %522 = shalt.err (!%p519_p1)
}
 0x2bb   :  { %390 = dma.vmem_to_hbm [thread:$0]  %s388_s21, 16, %s669_s7, [#allocation5]  }
 0x2bc   :  { %525 = dma.done.wait [#allocation5], 16  }
 0x2bd   :  { %526 = vsyncadd [#allocation5], 4294967280 }
 0x2be   :  { %394 = vsyncpa [#allocation4], 1 }
 0x2bf   :  { %395 = vsyncpa [#allocation5], 1 }

</bundles_post_ra>
